<compile_context>
chip_gen: v6e
topology: v6e:2x2x1
jax: 0.10.0
libtpu: 0.0.40
codegen_flags: <defaults>
</compile_context>

<pallas_src>
import functools
import math

import jax
import jax.numpy as jnp
import numpy as np
from jax.experimental import pallas as pl
from jax.experimental.pallas import tpu as pltpu

_BLOCK_BYTE_BUDGET = 4 * 1024 * 1024      # per-block target size (per array)
_MIN_VMEM_LIMIT = 32 * 1024 * 1024        # explicit scoped-VMEM request


# ----------------------------- hardware gating -----------------------------

def _device_kind():
    try:
        return jax.devices()[0].device_kind.lower()
    except Exception:
        return ""


def _is_multicore_chip():
    # Only v7x has 2 TensorCores per chip; v5e / v6e have 1.
    kind = _device_kind()
    return ("v7" in kind) or ("7x" in kind)


def _has_bf16_vpu():
    # v5e and older have no bf16 VPU/EUP; keep the f32 upcast there.
    kind = _device_kind()
    if not kind:
        return False
    return not any(tag in kind for tag in ("v2", "v3", "v4", "v5"))


def _compute_dtype(dtype):
    if jnp.dtype(dtype) == jnp.dtype(jnp.bfloat16) and _has_bf16_vpu():
        return jnp.bfloat16
    return jnp.float32


def _sublane_multiple(dtype):
    # Native sublane tile: 8 rows for 32-bit, 16 for bf16, 32 for int8/fp8.
    return 8 * max(1, 4 // jnp.dtype(dtype).itemsize)


def _round_down(value, multiple):
    return max(multiple, (value // multiple) * multiple)


def _compiler_params(dim_semantics, block_bytes):
    # in + out blocks, double-buffered, plus slack for scratch / constants.
    needed = 4 * block_bytes + (4 << 20)
    return pltpu.CompilerParams(
        dimension_semantics=dim_semantics,
        vmem_limit_bytes=int(max(_MIN_VMEM_LIMIT, needed)))


# --------------------------------- kernels ---------------------------------

def _power_softmax_kernel(x_ref, o_ref, *, power, reduce_axis, compute_dtype):
    x = x_ref[...].astype(compute_dtype)
    p = jnp.abs(x) if power == 1 else x ** power
    denom = jnp.sum(p, axis=reduce_axis, keepdims=True, dtype=jnp.float32)
    if power == 1:
        denom = jnp.maximum(denom, 1e-12)
        inv = pl.reciprocal(denom, approx=True)     # EUP vrcp; denom clamped
        out = x * inv
    else:
        inv = pl.reciprocal(denom, approx=False)    # one exact recip per row
        out = p * inv
    o_ref[...] = out.astype(o_ref.dtype)


def _packed_lastaxis_kernel(x_ref, m_ref, o_ref, *, power, compute_dtype):
    # x block: (rows, k*D) -> k complete reduction segments per 128-lane row.
    # m block: constant (k*D, k*D) 0/1 block-diagonal "segmented sum+broadcast"
    # matrix, run on the otherwise-idle MXU so output stores stay lane-dense.
    x = x_ref[...].astype(compute_dtype)
    p = jnp.abs(x) if power == 1 else x ** power
    p32 = p.astype(jnp.float32)
    denom = jnp.dot(p32, m_ref[...],
                    preferred_element_type=jnp.float32,
                    precision=jax.lax.Precision.HIGHEST)
    if power == 1:
        denom = jnp.maximum(denom, 1e-12)
        out = x.astype(jnp.float32) * pl.reciprocal(denom, approx=True)
    else:
        # Approx reciprocal + one Newton step: keeps per-element VPU work low
        # in the lane-packed regime while staying ~f32 accurate.
        inv = pl.reciprocal(denom, approx=True)
        inv = inv * (2.0 - denom * inv)
        out = p32 * inv
    o_ref[...] = out.astype(o_ref.dtype)


# --------------------------------- wrapper ----------------------------------

def power_softmax(x, power, dim):
    """Pallas implementation of PowerSoftmax.forward."""
    # Integral power -> Python int: x**power lowers to integer_pow (VPU) and
    # stays finite for negative inputs (matches torch.pow with integer exp).
    if isinstance(power, float) and float(power).is_integer():
        power = int(power)

    ndim = x.ndim
    dim = dim % ndim
    shape = x.shape
    itemsize = jnp.dtype(x.dtype).itemsize
    cdt = _compute_dtype(x.dtype)
    sub = _sublane_multiple(x.dtype)
    multicore = _is_multicore_chip()

    if dim == ndim - 1:
        # ---------------- Reduce over the last (lane) axis. ----------------
        D = int(shape[-1])
        R = int(math.prod(shape[:-1])) if ndim > 1 else 1

        # Lane-dense packing for narrow reductions: fold k whole D-segments
        # per row via a contiguous reshape (no HBM transpose). k must divide R
        # so every segment stays inside one packed row / one block.
        k = 1
        if D < 128:
            k = max(1, 128 // D)
            while k > 1 and R % k != 0:
                k -= 1
        width = k * D
        rows = R // k
        x2 = x.reshape(rows, width)

        max_rows = max(1, _BLOCK_BYTE_BUDGET // max(1, width * itemsize))
        tile_r = min(rows, _round_down(max_rows, sub))
        # Split only on multi-TC chips (v7x); v5e/v6e keep one big block.
        if multicore and tile_r >= rows and rows >= 2 * sub:
            tile_r = _round_down(rows // 2, sub)
        grid = (pl.cdiv(rows, tile_r),)
        block_bytes = tile_r * width * itemsize
        # TODO(synk): for pathologically wide rows (block > VMEM even at
        # tile_r == sub) add a split-D accumulation path; here we only raise
        # vmem_limit_bytes to cover the forced block size.

        if k > 1:
            seg = np.arange(width) // D
            m = jnp.asarray((seg[:, None] == seg[None, :]).astype(np.float32))
            out2 = pl.pallas_call(
                functools.partial(_packed_lastaxis_kernel, power=power,
                                  compute_dtype=cdt),
                out_shape=jax.ShapeDtypeStruct((rows, width), x.dtype),
                grid=grid,
                in_specs=[pl.BlockSpec((tile_r, width), lambda i: (i, 0)),
                          pl.BlockSpec((width, width), lambda i: (0, 0))],
                out_specs=pl.BlockSpec((tile_r, width), lambda i: (i, 0)),
                compiler_params=_compiler_params(("parallel",), block_bytes),
            )(x2, m)
        else:
            out2 = pl.pallas_call(
                functools.partial(_power_softmax_kernel, power=power,
                                  reduce_axis=-1, compute_dtype=cdt),
                out_shape=jax.ShapeDtypeStruct((rows, width), x.dtype),
                grid=grid,
                in_specs=[pl.BlockSpec((tile_r, width), lambda i: (i, 0))],
                out_specs=pl.BlockSpec((tile_r, width), lambda i: (i, 0)),
                compiler_params=_compiler_params(("parallel",), block_bytes),
            )(x2)
        return out2.reshape(shape)

    # ------- Reduce over a non-last axis (no transposes; sublane reduce). -------
    C = int(shape[dim])
    pre = int(math.prod(shape[:dim])) if dim > 0 else 1
    post = int(math.prod(shape[dim + 1:]))
    x3 = x.reshape(pre, C, post)

    if post <= 128:
        tile_l = post
        # TODO(synk): post < 128 leaves lanes idle; packing batches into lanes
        # would require a transpose, so masked stores are accepted for tiny post.
    else:
        max_lanes = max(1, _BLOCK_BYTE_BUDGET // max(1, C * itemsize))
        tile_l = min(post, _round_down(max_lanes, 128))

    # Tile the batch axis too so blocks reach ~budget size (1-row blocks made
    # the ~0.35 us per-grid-step overhead dominate for CNN-style shapes).
    max_b = max(1, _BLOCK_BYTE_BUDGET // max(1, C * tile_l * itemsize))
    tile_b = min(pre, max_b)
    if (multicore and pre >= 2
            and pl.cdiv(pre, tile_b) == 1 and pl.cdiv(post, tile_l) == 1):
        tile_b = max(1, pre // 2)   # feed both v7x TensorCores
    grid = (pl.cdiv(pre, tile_b), pl.cdiv(post, tile_l))
    block_bytes = tile_b * C * tile_l * itemsize

    out3 = pl.pallas_call(
        functools.partial(_power_softmax_kernel, power=power, reduce_axis=1,
                          compute_dtype=cdt),
        out_shape=jax.ShapeDtypeStruct((pre, C, post), x.dtype),
        grid=grid,
        in_specs=[pl.BlockSpec((tile_b, C, tile_l), lambda b, l: (b, 0, l))],
        out_specs=pl.BlockSpec((tile_b, C, tile_l), lambda b, l: (b, 0, l)),
        compiler_params=_compiler_params(("parallel", "parallel"), block_bytes),
    )(x3)
    return out3.reshape(shape)


def _reference(x, power, dim):
    if power == 1:
        denom = jnp.maximum(jnp.sum(jnp.abs(x), axis=dim, keepdims=True), 1e-12)
        return x / denom
    p = x ** power
    return p / jnp.sum(p, axis=dim, keepdims=True)


if __name__ == "__main__":
    key = jax.random.PRNGKey(0)
    k1, k2, k3 = jax.random.split(key, 3)

    # Case 1: power=3, dim=-1, D=16 < 128 -> lane-dense packed path (MXU
    # segmented sum).  Positive inputs avoid denominator cancellation so the
    # tolerance only reflects matmul / reciprocal rounding.
    x1 = jax.random.uniform(k1, (2, 4, 16, 16), dtype=jnp.float32,
                            minval=0.1, maxval=1.1)
    out1 = power_softmax(x1, power=3, dim=-1)
    jax.block_until_ready(out1)
    np.testing.assert_allclose(np.asarray(out1), np.asarray(_reference(x1, 3, -1)),
                               rtol=1e-4, atol=1e-6)

    # Case 1b: all-negative inputs with odd integer power -> checks that pow
    # lowered as integer_pow (no exp/log NaNs); denominator has no cancellation.
    out1b = power_softmax(-x1, power=3, dim=-1)
    jax.block_until_ready(out1b)
    assert bool(jnp.all(jnp.isfinite(out1b)))
    np.testing.assert_allclose(np.asarray(out1b),
                               np.asarray(_reference(-x1, 3, -1)),
                               rtol=1e-4, atol=1e-6)

    # Case 2: power=1 (L1 normalize) over the channel axis (dim=1) ->
    # sublane-reduction path with batch+lane tiling; approx vrcp denominator
    # -> slightly looser tolerance.
    x2 = jax.random.normal(k2, (2, 4, 16, 16), dtype=jnp.float32)
    out2 = power_softmax(x2, power=1, dim=1)
    jax.block_until_ready(out2)
    np.testing.assert_allclose(np.asarray(out2), np.asarray(_reference(x2, 1, 1)),
                               rtol=5e-3, atol=1e-6)

    # Case 3: power=3, dim=-1 with D=256 >= 128 -> generic lane-reduction path
    # (exact per-row reciprocal, tight tolerance).
    x3 = jax.random.uniform(k3, (4, 8, 256), dtype=jnp.float32,
                            minval=0.1, maxval=1.1)
    out3 = power_softmax(x3, power=3, dim=-1)
    jax.block_until_ready(out3)
    np.testing.assert_allclose(np.asarray(out3), np.asarray(_reference(x3, 3, -1)),
                               rtol=1e-5, atol=1e-6)

    # Case 4: power=1, dim=-1, D=16 -> packed path with |x| (no cancellation).
    out4 = power_softmax(x2, power=1, dim=-1)
    jax.block_until_ready(out4)
    np.testing.assert_allclose(np.asarray(out4), np.asarray(_reference(x2, 1, -1)),
                               rtol=5e-3, atol=1e-6)

    print("KERNEL_OK")
</pallas_src>

<mosaic_0001>
module attributes {stable_mosaic.version = 11 : i64} {
  func.func @_packed_lastaxis_kernel(%arg0: i32, %arg1: memref<16x128xf32, #tpu.memory_space<vmem>>, %arg2: memref<128x128xf32, #tpu.memory_space<vmem>>, %arg3: memref<16x128xf32, #tpu.memory_space<vmem>>) attributes {dimension_semantics = [#tpu.dimension_semantics<parallel>], iteration_bounds = array<i64: 1>, scalar_prefetch = 0 : i64, scratch_operands = 0 : i64, tpu.core_type = #tpu.core_type<tc>, window_params = [{transform_indices = @transform_0, window_bounds = array<i64: 16, 128>}, {pipeline_mode = #tpu.pipeline_mode<synchronous>, transform_indices = @transform_1, window_bounds = array<i64: 128, 128>}, {transform_indices = @transform_2, window_bounds = array<i64: 16, 128>}]} {
    %c0 = arith.constant 0 : index
    %c0_0 = arith.constant 0 : index
    %0 = vector.load %arg1[%c0, %c0_0] : memref<16x128xf32, #tpu.memory_space<vmem>>, vector<16x128xf32>
    %1 = arith.mulf %0, %0 : vector<16x128xf32>
    %2 = arith.mulf %0, %1 : vector<16x128xf32>
    %c0_1 = arith.constant 0 : index
    %c0_2 = arith.constant 0 : index
    %3 = vector.load %arg2[%c0_1, %c0_2] : memref<128x128xf32, #tpu.memory_space<vmem>>, vector<128x128xf32>
    %cst = arith.constant dense<0.000000e+00> : vector<16x128xf32>
    %4 = tpu.matmul %2, %3, %cst {dimension_numbers = #tpu.dot_dimension_numbers<[1], [0], [0], [1], [0, 0, 1, 1], [], []>, precision = #tpu.contract_precision<fp32>} : vector<16x128xf32>, vector<128x128xf32>, vector<16x128xf32> -> vector<16x128xf32>
    %5 = tpu.reciprocal %4 {approx = true} : vector<16x128xf32> -> vector<16x128xf32>
    %6 = arith.mulf %4, %5 : vector<16x128xf32>
    %cst_3 = arith.constant 2.000000e+00 : f32
    %7 = vector.broadcast %cst_3 : f32 to vector<16x128xf32>
    %8 = arith.subf %7, %6 : vector<16x128xf32>
    %9 = arith.mulf %5, %8 : vector<16x128xf32>
    %10 = arith.mulf %2, %9 : vector<16x128xf32>
    %c0_4 = arith.constant 0 : index
    %c0_5 = arith.constant 0 : index
    %11 = vector.load %arg3[%c0_4, %c0_5] : memref<16x128xf32, #tpu.memory_space<vmem>>, vector<16x128xf32>
    tpu.vector_store %arg3[%c0_4, %c0_5], %10 {strides = array<i32>} : memref<16x128xf32, #tpu.memory_space<vmem>>, vector<16x128xf32>,
    return
  }
  func.func @transform_0(%arg0: i32) -> (i32, i32) {
    %c0_i32 = arith.constant 0 : i32
    %c0_i32_0 = arith.constant 0 : i32
    return %arg0, %c0_i32 : i32, i32
  }
  func.func @transform_1(%arg0: i32) -> (i32, i32) {
    %c0_i32 = arith.constant 0 : i32
    %c0_i32_0 = arith.constant 0 : i32
    %c0_i32_1 = arith.constant 0 : i32
    return %c0_i32, %c0_i32_0 : i32, i32
  }
  func.func @transform_2(%arg0: i32) -> (i32, i32) {
    %c0_i32 = arith.constant 0 : i32
    %c0_i32_0 = arith.constant 0 : i32
    return %arg0, %c0_i32 : i32, i32
  }
}

</mosaic_0001>

<bundles_post_ra>
// kernel: tpu_custom_call.1
= control target key start
LH: loop header
LB: loop body
LE: loop exit
PB: predicated region body
PF: predicated region fallthrough
CT: control target
= control target key end

     0   :  { %7 = vsyncpa [#allocation3], 0  ;;  %s1567_s0 = inlined_call_operand.hbm [shape: f32[16,128], index: 0, kind: input, shape index: {}]   ;;  %s1568_s1 = inlined_call_operand.hbm [shape: f32[128,128], index: 1, kind: input, shape index: {}]   ;;  %s1569_s2 = inlined_call_operand.hbm [shape: f32[16,128], index: 2, kind: output, shape index: {}]  }
   0x1   :  { %8 = vsyncpa [#allocation6], 0 }
   0x2   :  { %9 = vsyncpa [#allocation4], 0  ;;  %s1169_s9 = smov [#allocation2]  }
   0x3   :  { %s15_s10 = sshll.u32 %s1169_s9, 4  ;;  %s16_s10 = int_to_ptr.vmem [resolvable:$true] %s15_s10 }
   0x4   :  { %s1111_s11 = scalar_lea.vmem %s16_s10, 256  ;;  %p1116_p1 = scmp.lt.s32.totalorder %s16_s10, %s16_s10 }
   0x5   :  { %p1112_p0 = scmp.ne.s32.totalorder %s16_s10, %s1111_s11  ;;  %p1117_p2 = scmp.lt.s32.totalorder %s1111_s11, %s1111_s11 }
   0x7   :  { %p1118_p3 = por %p1117_p2, %p1116_p1 }
   0x9   :  { %p1119_p4 = pnand %p1118_p3, %p1112_p0 }
   0xb   :  { %1122 = shalt.err (!%p1119_p4)
}
   0xc   :  { %s1170_s12 = smov 128   ;;  %s1171_s13 = smov 8  }
   0xd   :  { %21 = dma.hbm_to_vmem [thread:$0]  %s1567_s0, 256, %s16_s10, [#allocation3], %s1170_s12, %s1170_s12, %s1171_s13  }
   0xe   :  { %s1172_s16 = smov [#allocation5]  }
   0xf   :  { %s27_s17 = sshll.u32 %s1172_s16, 4  ;;  %s28_s17 = int_to_ptr.vmem [resolvable:$true] %s27_s17 }
  0x10   :  { %s1131_s18 = scalar_lea.vmem %s28_s17, 2048  ;;  %p1136_p6 = scmp.lt.s32.totalorder %s28_s17, %s28_s17 }
  0x11   :  { %p1132_p5 = scmp.ne.s32.totalorder %s28_s17, %s1131_s18  ;;  %p1137_p7 = scmp.lt.s32.totalorder %s1131_s18, %s1131_s18 }
  0x13   :  { %p1138_p8 = por %p1137_p7, %p1136_p6 }
  0x15   :  { %p1139_p9 = pnand %p1138_p8, %p1132_p5 }
  0x17   :  { %1142 = shalt.err (!%p1139_p9)
}
  0x18   :  { %33 = dma.hbm_to_vmem [thread:$0]  %s1568_s1, 2048, %s28_s17, [#allocation6], %s1170_s12, %s1170_s12, %s1171_s13  }
  0x19   :  { %1163 = dma.done.wait [#allocation3], 256  }
  0x1a   :  { %1164 = vsyncadd [#allocation3], 4294967040 }
  0x1b   :  { %1165 = dma.done.wait [#allocation6], 2048  }
  0x1c   :  { %1166 = vsyncadd [#allocation6], 4294965248  ;;  %v61_v0 = vld [vmem:[#allocation5 + $0x78] sm:$0xff]  ;;  %v60_v1 = vld [vmem:[#allocation5 + $0x70] sm:$0xff]  ;;  %s1173_s0 = smov [#allocation7]  }
  0x1d   :  { %v59_v2 = vld [vmem:[#allocation5 + $0x68] sm:$0xff]  ;;  %v1201_v3 = vand.u32 4294901760, %v61_v0  ;;  %v1203_v4 = vand.u32 4294901760, %v60_v1  ;;  %v58_v6 = vld [vmem:[#allocation5 + $0x60] sm:$0xff]  ;;  %v57_v7 = vld [vmem:[#allocation5 + $0x58] sm:$0xff]  ;;  %s763_s1 = sshll.u32 %s1173_s0, 4  ;;  %s764_s1 = int_to_ptr.vmem [resolvable:$true] %s763_s1 }
  0x1e   :  { %v1205_v5 = vand.u32 4294901760, %v59_v2  ;;  %v56_v8 = vld [vmem:[#allocation5 + $0x50] sm:$0xff]  ;;  %v1207_v9 = vand.u32 4294901760, %v58_v6  ;;  %v1209_v10 = vand.u32 4294901760, %v57_v7  ;;  %v55_v12 = vld [vmem:[#allocation5 + $0x48] sm:$0xff]  ;;  %v54_v13 = vld [vmem:[#allocation5 + $0x40] sm:$0xff]  ;;  %p1148_p11 = scmp.lt.s32.totalorder %s764_s1, %s764_s1 }
  0x1f   :  { %v1211_v11 = vand.u32 4294901760, %v56_v8  ;;  %884 = vmatprep.subr.mxu0 %v1201_v3  ;;  %v1215_v14 = vsub.f32 %v61_v0, %v1201_v3  ;;  %v1218_v15 = vsub.f32 %v60_v1, %v1203_v4  ;;  %v1220_v16 = vand.u32 4294901760, %v55_v12  ;;  %v53_v18 = vld [vmem:[#allocation5 + $0x38] sm:$0xff]  ;;  %v52_v28 = vld [vmem:[#allocation5 + $0x30] sm:$0xff]  ;;  %v51_v35 = vld [vmem:[#allocation5 + $0x28] sm:$0xff]  ;;  %s1143_s21 = scalar_lea.vmem %s764_s1, 256 }
  0x20   :  { %v1223_v17 = vsub.f32 %v59_v2, %v1205_v5  ;;  %885 = vmatpush3.msra.mxu0 %v1201_v3  ;;  %v1227_v19 = vsub.f32 %v58_v6, %v1207_v9  ;;  %v1230_v20 = vsub.f32 %v57_v7, %v1209_v10  ;;  %v1242_v24 = vand.u32 4294901760, %v54_v13  ;;  %v50_v42 = vld [vmem:[#allocation5 + $0x20] sm:$0xff]  ;;  %v40_v47 = vld [vmem:[#allocation2] sm:$0xff]  ;;  %v49_v49 = vld [vmem:[#allocation5 + $0x18] sm:$0xff]  ;;  %p1144_p10 = scmp.ne.s32.totalorder %s764_s1, %s1143_s21  ;;  %p1149_p12 = scmp.lt.s32.totalorder %s1143_s21, %s1143_s21 }
  0x21   :  { %886 = vmatprep.subr.mxu0 %v1203_v4  ;;  %v1234_v21 = vand.u32 4294901760, %v1215_v14  ;;  %v1237_v22 = vand.u32 4294901760, %v1218_v15  ;;  %v1248_v26 = vand.u32 4294901760, %v53_v18  ;;  %v1254_v29 = vsub.f32 %v56_v8, %v1211_v11  ;;  %v41_v50 = vld [vmem:[#allocation2 + $0x8] sm:$0xff]  ;;  %v48_v60 = vld [vmem:[#allocation5 + $0x10] sm:$0xff]  ;;  %v47_v6 = vld [vmem:[#allocation5 + $0x8] sm:$0xff] }
  0x22   :  { %v1240_v23 = vand.u32 4294901760, %v1223_v17  ;;  %887 = vmatpush3.msra.mxu0 %v1203_v4  ;;  %v1246_v25 = vand.u32 4294901760, %v1227_v19  ;;  %v1251_v27 = vand.u32 4294901760, %v1230_v20  ;;  %v1264_v33 = vsub.f32 %v55_v12, %v1220_v16  ;;  %p1150_p13 = por %p1149_p12, %p1148_p11 }
  0x23   :  { %888 = vmatprep.subr.mxu0 %v1205_v5  ;;  %v167_v30 = vsub.f32 %v1215_v14, %v1234_v21  ;;  %v174_v31 = vsub.f32 %v1218_v15, %v1237_v22  ;;  %v1268_v34 = vand.u32 4294901760, %v1254_v29  ;;  %v1273_v39 = vand.u32 4294901760, %v52_v28 }
  0x24   :  { %v181_v32 = vsub.f32 %v1223_v17, %v1240_v23  ;;  %889 = vmatpush3.msra.mxu0 %v1205_v5  ;;  %v188_v38 = vsub.f32 %v1227_v19, %v1246_v25  ;;  %v195_v40 = vsub.f32 %v1230_v20, %v1251_v27  ;;  %v1279_v41 = vand.u32 4294901760, %v1264_v33  ;;  %p1151_p0 = pnand %p1150_p13, %p1144_p10 }
  0x25   :  { %890 = vmatprep.subr.mxu0 %v1207_v9  ;;  %v168_v36 = vand.u32 4294901760, %v167_v30  ;;  %v175_v37 = vand.u32 4294901760, %v174_v31  ;;  %v1282_v43 = vsub.f32 %v54_v13, %v1242_v24  ;;  %v1285_v45 = vand.u32 4294901760, %v51_v35  ;;  %v46_v31 = vld [vmem:[#allocation5] sm:$0xff] }
  0x26   :  { %891 = vmatpush3.msra.mxu0 %v1207_v9  ;;  %v182_v44 = vand.u32 4294901760, %v181_v32  ;;  %v1288_v46 = vsub.f32 %v53_v18, %v1248_v26  ;;  %v202_v48 = vsub.f32 %v1254_v29, %v1268_v34  ;;  %v189_v51 = vand.u32 4294901760, %v188_v38 }
  0x27   :  { %892 = vmatprep.subr.mxu0 %v1209_v10  ;;  %919 = vmatprep.subr.mxu1 %v168_v36  ;;  %v1294_v52 = vand.u32 4294901760, %v50_v42  ;;  %v1297_v53 = vand.u32 4294901760, %v1282_v43  ;;  %v1300_v54 = vsub.f32 %v52_v28, %v1273_v39  ;;  %v196_v55 = vand.u32 4294901760, %v195_v40 }
  0x28   :  { %893 = vmatpush3.msra.mxu0 %v1209_v10  ;;  %920 = vmatpush3.msra.mxu1 %v168_v36  ;;  %v209_v56 = vsub.f32 %v1264_v33, %v1279_v41  ;;  %v42_v57 = vmul.f32 %v40_v47, %v40_v47  ;;  %v1306_v58 = vand.u32 4294901760, %v49_v49  ;;  %v1309_v59 = vand.u32 4294901760, %v1288_v46 }
  0x29   :  { %894 = vmatprep.subr.mxu0 %v1211_v11  ;;  %921 = vmatprep.subr.mxu1 %v175_v37  ;;  %v1312_v61 = vsub.f32 %v51_v35, %v1285_v45  ;;  %v43_v62 = vmul.f32 %v41_v50, %v41_v50  ;;  %v203_v63 = vand.u32 4294901760, %v202_v48  ;;  %v216_v1 = vsub.f32 %v1282_v43, %v1297_v53 }
  0x2a   :  { %895 = vmatpush3.msra.mxu0 %v1211_v11  ;;  %922 = vmatpush3.msra.mxu1 %v175_v37  ;;  %v1315_v0 = vmul.f32 %v42_v57, %v40_v47  ;;  %v1321_v2 = vand.u32 4294901760, %v1300_v54  ;;  %v1324_v7 = vsub.f32 %v50_v42, %v1294_v52  ;;  %v210_v12 = vand.u32 4294901760, %v209_v56 }
  0x2b   :  { %896 = vmatprep.subr.mxu0 %v1220_v16  ;;  %923 = vmatprep.subr.mxu1 %v182_v44  ;;  %v1326_v8 = vmul.f32 %v43_v62, %v41_v50  ;;  %v1329_v13 = vand.u32 4294901760, %v48_v60  ;;  %v223_v28 = vsub.f32 %v1288_v46, %v1309_v59  ;;  %v1338_v30 = vand.u32 4294901760, %v1312_v61 }
  0x2c   :  { %897 = vmatpush3.msra.mxu0 %v1220_v16  ;;  %924 = vmatpush3.msra.mxu1 %v182_v44  ;;  %1574 = vst [vmem:[#allocation11_spill] sm:$0xff] %v1315_v0  ;;  %v1332_v18 = vand.u32 4294901760, %v1315_v0  ;;  %v1341_v32 = vsub.f32 %v49_v49, %v1306_v58  ;;  %v1347_v36 = vand.u32 4294901760, %v47_v6  ;;  %v217_v38 = vand.u32 4294901760, %v216_v1 }
  0x2d   :  { %898 = vmatprep.subr.mxu0 %v1242_v24  ;;  %925 = vmatprep.subr.mxu1 %v189_v51  ;;  %1575 = vst [vmem:[#allocation12_spill] sm:$0xff] %v1326_v8  ;;  %v1344_v35 = vand.u32 4294901760, %v1326_v8  ;;  %v230_v40 = vsub.f32 %v1300_v54, %v1321_v2  ;;  %v1357_v42 = vand.u32 4294901760, %v1324_v7  ;;  %v1364_v47 = vand.u32 4294901760, %v46_v31 }
  0x2e   :  { %899 = vmatpush3.msra.mxu0 %v1242_v24  ;;  %926 = vmatpush3.msra.mxu1 %v189_v51  ;;  %v1351_v37 = vsub.f32 %v1315_v0, %v1332_v18  ;;  %v1367_v48 = vsub.f32 %v48_v60, %v1329_v13  ;;  %v224_v49 = vand.u32 4294901760, %v223_v28  ;;  %v237_v50 = vsub.f32 %v1312_v61, %v1338_v30 }
  0x2f   :  { %900 = vmatprep.subr.mxu0 %v1248_v26  ;;  %927 = vmatprep.subr.mxu1 %v196_v55  ;;  %v1361_v44 = vsub.f32 %v1326_v8, %v1344_v35  ;;  %v1379_v57 = vsub.f32 %v47_v6, %v1347_v36  ;;  %v231_v60 = vand.u32 4294901760, %v230_v40  ;;  %v244_v62 = vsub.f32 %v1324_v7, %v1357_v42 }
  0x30   :  { %901 = vmatpush3.msra.mxu0 %v1248_v26  ;;  %928 = vmatpush3.msra.mxu1 %v196_v55  ;;  %v1570_v51 = vand.u32 4294901760, %v1351_v37  ;;  %v1374_v55 = vand.u32 4294901760, %v1341_v32  ;;  %v1389_v1 = vsub.f32 %v46_v31, %v1364_v47  ;;  %v238_v6 = vand.u32 4294901760, %v237_v50 }
  0x31   :  { %902 = vmatprep.subr.mxu0 %v1273_v39  ;;  %929 = vmatprep.subr.mxu1 %v203_v63  ;;  %v1571_v56 = vand.u32 4294901760, %v1361_v44  ;;  %v1402_v31 = vand.u32 4294901760, %v1379_v57  ;;  %v245_v40 = vand.u32 4294901760, %v244_v62 }
  0x32   :  { %903 = vmatpush3.msra.mxu0 %v1273_v39  ;;  %930 = vmatpush3.msra.mxu1 %v203_v63  ;;  %v1386_v63 = vand.u32 4294901760, %v1367_v48  ;;  %v251_v28 = vsub.f32 %v1341_v32, %v1374_v55 }
  0x33   :  { %904 = vmatprep.subr.mxu0 %v1285_v45  ;;  %931 = vmatprep.subr.mxu1 %v210_v12  ;;  %v265_v62 = vsub.f32 %v1379_v57, %v1402_v31 }
  0x34   :  { %905 = vmatpush3.msra.mxu0 %v1285_v45  ;;  %932 = vmatpush3.msra.mxu1 %v210_v12  ;;  %v146_v12 = vsub.f32 %v1351_v37, %v1570_v51  ;;  %v258_v50 = vsub.f32 %v1367_v48, %v1386_v63  ;;  %v1409_v51 = vand.u32 4294901760, %v1389_v1 }
  0x35   :  { %906 = vmatprep.subr.mxu0 %v1294_v52  ;;  %933 = vmatprep.subr.mxu1 %v217_v38 }
  0x36   :  { %907 = vmatpush3.msra.mxu0 %v1294_v52  ;;  %934 = vmatpush3.msra.mxu1 %v217_v38  ;;  %v156_v38 = vsub.f32 %v1361_v44, %v1571_v56  ;;  %v252_v56 = vand.u32 4294901760, %v251_v28  ;;  %v272_v8 = vsub.f32 %v1389_v1, %v1409_v51 }
  0x37   :  { %908 = vmatprep.subr.mxu0 %v1306_v58  ;;  %935 = vmatprep.subr.mxu1 %v224_v49 }
  0x38   :  { %909 = vmatpush3.msra.mxu0 %v1306_v58  ;;  %936 = vmatpush3.msra.mxu1 %v224_v49  ;;  %v147_v49 = vand.u32 4294901760, %v146_v12  ;;  %v157_v0 = vand.u32 4294901760, %v156_v38  ;;  %v273_v12 = vand.u32 4294901760, %v272_v8 }
  0x39   :  { %910 = vmatprep.subr.mxu0 %v1329_v13  ;;  %937 = vmatprep.subr.mxu1 %v231_v60 }
  0x3a   :  { %911 = vmatpush3.msra.mxu0 %v1329_v13  ;;  %938 = vmatpush3.msra.mxu1 %v231_v60  ;;  %v259_v60 = vand.u32 4294901760, %v258_v50 }
  0x3b   :  { %912 = vmatprep.subr.mxu0 %v1347_v36  ;;  %939 = vmatprep.subr.mxu1 %v238_v6 }
  0x3c   :  { %913 = vmatpush3.msra.mxu0 %v1347_v36  ;;  %940 = vmatpush3.msra.mxu1 %v238_v6  ;;  %v266_v6 = vand.u32 4294901760, %v265_v62 }
  0x3d   :  { %914 = vmatprep.subr.mxu0 %v1364_v47  ;;  %941 = vmatprep.subr.mxu1 %v245_v40 }
  0x3e   :  { %915 = vmatpush3.msra.mxu0 %v1364_v47  ;;  %942 = vmatpush3.msra.mxu1 %v245_v40 }
  0x3f   :  { %916 = vmatprep.mubr.f32.mxu0 %v147_v49  ;;  %943 = vmatprep.subr.mxu1 %v252_v56 }
  0x40   :  { %954 = vmatprep.subr.mxu0 %v1215_v14  ;;  %917 = vmatmul.mubr.f32.vlgmr.msra.gmra.mxu0 %v157_v0 }
  0x41   :  { %944 = vmatpush3.msra.mxu1 %v252_v56  ;;  %955 = vmatpush3.msra.mxu0 %v1215_v14  ;;  %v1576_v14 = vand.u32 4294901760, %v1351_v37 }
  0x42   :  { %945 = vmatprep.subr.mxu1 %v259_v60  ;;  %956 = vmatprep.subr.mxu0 %v1218_v15 }
  0x43   :  { %946 = vmatpush3.msra.mxu1 %v259_v60  ;;  %957 = vmatpush3.msra.mxu0 %v1218_v15  ;;  %v1577_v15 = vand.u32 4294901760, %v1361_v44 }
  0x44   :  { %947 = vmatprep.subr.mxu1 %v266_v6  ;;  %958 = vmatprep.subr.mxu0 %v1223_v17 }
  0x45   :  { %948 = vmatpush3.msra.mxu1 %v266_v6  ;;  %959 = vmatpush3.msra.mxu0 %v1223_v17 }
  0x46   :  { %949 = vmatprep.subr.mxu1 %v273_v12  ;;  %960 = vmatprep.subr.mxu0 %v1227_v19 }
  0x47   :  { %950 = vmatpush3.msra.mxu1 %v273_v12  ;;  %951 = vmatprep.mubr.f32.mxu1 %v1332_v18 }
  0x48   :  { %961 = vmatpush3.msra.mxu0 %v1227_v19  ;;  %952 = vmatmul.mubr.f32.vlgmr.msra.gmra.mxu1 %v1344_v35 }
  0x49   :  { %962 = vmatprep.subr.mxu0 %v1230_v20  ;;  %989 = vmatprep.subr.mxu1 %v1201_v3 }
  0x4a   :  { %963 = vmatpush3.msra.mxu0 %v1230_v20  ;;  %990 = vmatpush3.msra.mxu1 %v1201_v3 }
  0x4b   :  { %964 = vmatprep.subr.mxu0 %v1254_v29  ;;  %991 = vmatprep.subr.mxu1 %v1203_v4 }
  0x4c   :  { %965 = vmatpush3.msra.mxu0 %v1254_v29  ;;  %992 = vmatpush3.msra.mxu1 %v1203_v4 }
  0x4d   :  { %966 = vmatprep.subr.mxu0 %v1264_v33  ;;  %993 = vmatprep.subr.mxu1 %v1205_v5 }
  0x4e   :  { %967 = vmatpush3.msra.mxu0 %v1264_v33  ;;  %994 = vmatpush3.msra.mxu1 %v1205_v5 }
  0x4f   :  { %968 = vmatprep.subr.mxu0 %v1282_v43  ;;  %995 = vmatprep.subr.mxu1 %v1207_v9 }
  0x50   :  { %969 = vmatpush3.msra.mxu0 %v1282_v43  ;;  %996 = vmatpush3.msra.mxu1 %v1207_v9 }
  0x51   :  { %970 = vmatprep.subr.mxu0 %v1288_v46  ;;  %997 = vmatprep.subr.mxu1 %v1209_v10 }
  0x52   :  { %971 = vmatpush3.msra.mxu0 %v1288_v46  ;;  %998 = vmatpush3.msra.mxu1 %v1209_v10 }
  0x53   :  { %972 = vmatprep.subr.mxu0 %v1300_v54  ;;  %999 = vmatprep.subr.mxu1 %v1211_v11 }
  0x54   :  { %973 = vmatpush3.msra.mxu0 %v1300_v54  ;;  %1000 = vmatpush3.msra.mxu1 %v1211_v11 }
  0x55   :  { %974 = vmatprep.subr.mxu0 %v1312_v61  ;;  %1001 = vmatprep.subr.mxu1 %v1220_v16 }
  0x56   :  { %975 = vmatpush3.msra.mxu0 %v1312_v61  ;;  %1002 = vmatpush3.msra.mxu1 %v1220_v16  ;;  %v1578_v61 = vld [vmem:[#allocation12_spill] sm:$0xff] }
  0x57   :  { %976 = vmatprep.subr.mxu0 %v1324_v7  ;;  %1003 = vmatprep.subr.mxu1 %v1242_v24 }
  0x58   :  { %977 = vmatpush3.msra.mxu0 %v1324_v7  ;;  %1004 = vmatpush3.msra.mxu1 %v1242_v24 }
  0x59   :  { %978 = vmatprep.subr.mxu0 %v1341_v32  ;;  %1005 = vmatprep.subr.mxu1 %v1248_v26 }
  0x5a   :  { %979 = vmatpush3.msra.mxu0 %v1341_v32  ;;  %1006 = vmatpush3.msra.mxu1 %v1248_v26 }
  0x5b   :  { %980 = vmatprep.subr.mxu0 %v1367_v48  ;;  %1007 = vmatprep.subr.mxu1 %v1273_v39 }
  0x5c   :  { %981 = vmatpush3.msra.mxu0 %v1367_v48  ;;  %1008 = vmatpush3.msra.mxu1 %v1273_v39 }
  0x5d   :  { %982 = vmatprep.subr.mxu0 %v1379_v57  ;;  %1009 = vmatprep.subr.mxu1 %v1285_v45 }
  0x5e   :  { %983 = vmatpush3.msra.mxu0 %v1379_v57  ;;  %1010 = vmatpush3.msra.mxu1 %v1285_v45 }
  0x5f   :  { %984 = vmatprep.subr.mxu0 %v1389_v1  ;;  %1011 = vmatprep.subr.mxu1 %v1294_v52 }
  0x60   :  { %985 = vmatpush3.msra.mxu0 %v1389_v1  ;;  %986 = vmatprep.mubr.f32.mxu0 %v1351_v37 }
  0x61   :  { %1012 = vmatpush3.msra.mxu1 %v1294_v52  ;;  %987 = vmatmul.mubr.f32.vlgmr.msra.gmra.mxu0 %v1361_v44 }
  0x62   :  { %1013 = vmatprep.subr.mxu1 %v1306_v58  ;;  %1024 = vmatprep.subr.mxu0 %v1234_v21 }
  0x63   :  { %1014 = vmatpush3.msra.mxu1 %v1306_v58  ;;  %1025 = vmatpush3.msra.mxu0 %v1234_v21 }
  0x64   :  { %1015 = vmatprep.subr.mxu1 %v1329_v13  ;;  %1026 = vmatprep.subr.mxu0 %v1237_v22 }
  0x65   :  { %1016 = vmatpush3.msra.mxu1 %v1329_v13  ;;  %1027 = vmatpush3.msra.mxu0 %v1237_v22 }
  0x66   :  { %1017 = vmatprep.subr.mxu1 %v1347_v36  ;;  %1028 = vmatprep.subr.mxu0 %v1240_v23 }
  0x67   :  { %1018 = vmatpush3.msra.mxu1 %v1347_v36  ;;  %1029 = vmatpush3.msra.mxu0 %v1240_v23 }
  0x68   :  { %1019 = vmatprep.subr.mxu1 %v1364_v47  ;;  %1030 = vmatprep.subr.mxu0 %v1246_v25 }
  0x69   :  { %1020 = vmatpush3.msra.mxu1 %v1364_v47  ;;  %1021 = vmatprep.mubr.f32.mxu1 %v1576_v14 }
  0x6a   :  { %1031 = vmatpush3.msra.mxu0 %v1246_v25  ;;  %1022 = vmatmul.mubr.f32.vlgmr.msra.gmra.mxu1 %v1577_v15 }
  0x6b   :  { %1032 = vmatprep.subr.mxu0 %v1251_v27  ;;  %1059 = vmatprep.subr.mxu1 %v1201_v3 }
  0x6c   :  { %1033 = vmatpush3.msra.mxu0 %v1251_v27  ;;  %1060 = vmatpush3.msra.mxu1 %v1201_v3 }
  0x6d   :  { %1034 = vmatprep.subr.mxu0 %v1268_v34  ;;  %1061 = vmatprep.subr.mxu1 %v1203_v4 }
  0x6e   :  { %1035 = vmatpush3.msra.mxu0 %v1268_v34  ;;  %1062 = vmatpush3.msra.mxu1 %v1203_v4 }
  0x6f   :  { %1036 = vmatprep.subr.mxu0 %v1279_v41  ;;  %1063 = vmatprep.subr.mxu1 %v1205_v5 }
  0x70   :  { %1037 = vmatpush3.msra.mxu0 %v1279_v41  ;;  %1064 = vmatpush3.msra.mxu1 %v1205_v5 }
  0x71   :  { %1038 = vmatprep.subr.mxu0 %v1297_v53  ;;  %1065 = vmatprep.subr.mxu1 %v1207_v9 }
  0x72   :  { %1039 = vmatpush3.msra.mxu0 %v1297_v53  ;;  %1066 = vmatpush3.msra.mxu1 %v1207_v9 }
  0x73   :  { %1040 = vmatprep.subr.mxu0 %v1309_v59  ;;  %1067 = vmatprep.subr.mxu1 %v1209_v10 }
  0x74   :  { %1041 = vmatpush3.msra.mxu0 %v1309_v59  ;;  %1068 = vmatpush3.msra.mxu1 %v1209_v10 }
  0x75   :  { %1042 = vmatprep.subr.mxu0 %v1321_v2  ;;  %1069 = vmatprep.subr.mxu1 %v1211_v11 }
  0x76   :  { %1043 = vmatpush3.msra.mxu0 %v1321_v2  ;;  %1070 = vmatpush3.msra.mxu1 %v1211_v11  ;;  %v1579_v2 = vld [vmem:[#allocation11_spill] sm:$0xff] }
  0x77   :  { %1044 = vmatprep.subr.mxu0 %v1338_v30  ;;  %1071 = vmatprep.subr.mxu1 %v1220_v16 }
  0x78   :  { %1045 = vmatpush3.msra.mxu0 %v1338_v30  ;;  %1072 = vmatpush3.msra.mxu1 %v1220_v16 }
  0x79   :  { %1046 = vmatprep.subr.mxu0 %v1357_v42  ;;  %1073 = vmatprep.subr.mxu1 %v1242_v24 }
  0x7a   :  { %1047 = vmatpush3.msra.mxu0 %v1357_v42  ;;  %1074 = vmatpush3.msra.mxu1 %v1242_v24 }
  0x7b   :  { %1048 = vmatprep.subr.mxu0 %v1374_v55  ;;  %1075 = vmatprep.subr.mxu1 %v1248_v26 }
  0x7c   :  { %1049 = vmatpush3.msra.mxu0 %v1374_v55  ;;  %1076 = vmatpush3.msra.mxu1 %v1248_v26 }
  0x7d   :  { %1050 = vmatprep.subr.mxu0 %v1386_v63  ;;  %1077 = vmatprep.subr.mxu1 %v1273_v39 }
  0x7e   :  { %1051 = vmatpush3.msra.mxu0 %v1386_v63  ;;  %1078 = vmatpush3.msra.mxu1 %v1273_v39 }
  0x7f   :  { %1052 = vmatprep.subr.mxu0 %v1402_v31  ;;  %1079 = vmatprep.subr.mxu1 %v1285_v45 }
  0x80   :  { %1053 = vmatpush3.msra.mxu0 %v1402_v31  ;;  %1080 = vmatpush3.msra.mxu1 %v1285_v45 }
  0x81   :  { %1054 = vmatprep.subr.mxu0 %v1409_v51  ;;  %1081 = vmatprep.subr.mxu1 %v1294_v52 }
  0x82   :  { %1055 = vmatpush3.msra.mxu0 %v1409_v51  ;;  %1056 = vmatprep.mubr.f32.mxu0 %v1332_v18 }
  0x83   :  { %1082 = vmatpush3.msra.mxu1 %v1294_v52  ;;  %1057 = vmatmul.mubr.f32.vlgmr.msra.gmra.mxu0 %v1344_v35 }
  0x84   :  { %1083 = vmatprep.subr.mxu1 %v1306_v58  ;;  %1091 = vmatprep.mubr.f32.mxu1 %v1332_v18 }
  0x85   :  { %1084 = vmatpush3.msra.mxu1 %v1306_v58 }
  0x86   :  { %1085 = vmatprep.subr.mxu1 %v1329_v13 }
  0x87   :  { %1086 = vmatpush3.msra.mxu1 %v1329_v13 }
  0x88   :  { %1087 = vmatprep.subr.mxu1 %v1347_v36 }
  0x89   :  { %1088 = vmatpush3.msra.mxu1 %v1347_v36 }
  0x8a   :  { %1089 = vmatprep.subr.mxu1 %v1364_v47 }
  0x8b   :  { %1090 = vmatpush3.msra.mxu1 %v1364_v47 }
  0x8c   :  { %1092 = vmatmul.mubr.f32.vlgmr.msra.gmra.mxu1 %v1344_v35 }
 0x100   :  { %v918_v3 = vpop.f32.mrf.mxu0 }
 0x102   :  { %v149_v4 = vpop.f32.mrf.mxu0 }
 0x108   :  { %v953_v5 = vpop.f32.mrf.mxu1 }
 0x109   :  { %v317_v17 = vadd.f32 %v953_v5, %v918_v3 }
 0x10a   :  { %v310_v10 = vpop.f32.mrf.mxu1 }
 0x10b   :  { %v311_v20 = vadd.f32 %v310_v10, %v149_v4 }
 0x121   :  { %v988_v9 = vpop.f32.mrf.mxu0 }
 0x122   :  { %v428_v21 = vadd.f32 %v988_v9, %v317_v17 }
 0x123   :  { %v420_v11 = vpop.f32.mrf.mxu0 }
 0x124   :  { %v421_v23 = vadd.f32 %v420_v11, %v311_v20 }
 0x12a   :  { %v1023_v16 = vpop.f32.mrf.mxu1 }
 0x12b   :  { %v525_v24 = vadd.f32 %v1023_v16, %v428_v21 }
 0x12c   :  { %v516_v22 = vpop.f32.mrf.mxu1 }
 0x12d   :  { %v517_v26 = vadd.f32 %v516_v22, %v421_v23 }
 0x143   :  { %v1058_v19 = vpop.f32.mrf.mxu0 }
 0x144   :  { %v650_v27 = vadd.f32 %v1058_v19, %v525_v24 }
 0x145   :  { %v643_v25 = vpop.f32.mrf.mxu0 }
 0x146   :  { %v644_v33 = vadd.f32 %v643_v25, %v517_v26 }
 0x14c   :  { %v1093_v29 = vpop.f32.mrf.mxu1 }
 0x14d   :  { %v743_v34 = vadd.f32 %v1093_v29, %v650_v27 }
 0x14e   :  { %v736_v39 = vpop.f32.mrf.mxu1 }
 0x14f   :  { %1099 = vrcp.f32 %v743_v34  ;;  %v737_v41 = vadd.f32 %v736_v39, %v644_v33 }
 0x151   :  { %1101 = vrcp.f32 %v737_v41 }
 0x15c   :  { %v1100_v43 = vpop.eup %1099 }
 0x15d   :  { %v749_v45 = vmul.f32 %v1100_v43, %v743_v34 }
 0x15e   :  { %v1102_v46 = vpop.eup %1101 }
 0x15f   :  { %v751_v52 = vsub.f32 2.0, %v749_v45  ;;  %v748_v53 = vmul.f32 %v1102_v46, %v737_v41 }
 0x161   :  { %v753_v54 = vmul.f32 %v1100_v43, %v751_v52  ;;  %v750_v58 = vsub.f32 2.0, %v748_v53 }
 0x163   :  { %v752_v59 = vmul.f32 %v1102_v46, %v750_v58  ;;  %v755_v0 = vmul.f32 %v753_v54, %v1578_v61 }
 0x165   :  { %v754_v7 = vmul.f32 %v752_v59, %v1579_v2  ;;  %757 = vst [vmem:[#allocation7 + $0x8] sm:$0xff] %v755_v0 }
 0x167   :  { %756 = vst [vmem:[#allocation7] sm:$0xff] %v754_v7 }
 0x168   :  { %1154 = shalt.err (!%p1151_p0)
}
 0x169   :  { %769 = dma.vmem_to_hbm [thread:$0]  %s764_s1, 256, %s1569_s2, [#allocation4], %s1170_s12, %s1170_s12, %s1171_s13  }
 0x16a   :  { %1167 = dma.done.wait [#allocation4], 256  }
 0x16b   :  { %1168 = vsyncadd [#allocation4], 4294967040 }
 0x16c   :  { %773 = vsyncpa [#allocation3], 1 }
 0x16d   :  { %774 = vsyncpa [#allocation6], 1 }
 0x16e   :  { %775 = vsyncpa [#allocation4], 1 }

</bundles_post_ra>
